<compile_context>
chip_gen: v7x
topology: tpu7x:2x2x1
jax: 0.10.0
libtpu: 0.0.40
codegen_flags: <defaults>
</compile_context>

<pallas_src>
import functools

import jax
import jax.numpy as jnp
import numpy as np
from jax.experimental import pallas as pl
from jax.experimental.pallas import tpu as pltpu


def _net2_kernel(a_ref, f_ref, w_ref, b_ref, x_out_ref, h_out_ref, *, inv_n):
    # xw = X @ W                     (MXU, bf16 x bf16 -> f32 accumulate)
    xw = jnp.dot(f_ref[...], w_ref[...], preferred_element_type=jnp.float32)
    # agg = A_norm @ xw + b          (MXU, bf16 inputs, f32 accumulate; VPU add)
    agg = jnp.dot(a_ref[...], xw.astype(a_ref.dtype),
                  preferred_element_type=jnp.float32) + b_ref[...]
    # relu                           (VPU)
    x_out = jnp.maximum(agg, 0.0)
    x_out_ref[...] = x_out.astype(x_out_ref.dtype)
    # h = sigmoid(mean over nodes)   (XLU sublane reduce + EUP exp/recip)
    s = jnp.sum(x_out, axis=0, keepdims=True) * inv_n
    denom = 1.0 + jnp.exp(-s)
    if hasattr(pl, "reciprocal"):
        h = pl.reciprocal(denom, approx=True)
    else:  # very old jax fallback
        h = 1.0 / denom
    h_out_ref[...] = h.astype(h_out_ref.dtype)


def net2_pallas_batched(a_norm, feature, weight, bias):
    """a_norm: [B,N,N], feature: [B,N,F], weight: [F,out], bias: [out]."""
    b, n, nfeat = feature.shape
    out_dim = weight.shape[1]

    kernel = functools.partial(_net2_kernel, inv_n=1.0 / float(n))

    itemsize_bf16, itemsize_f32 = 2, 4
    cost = pl.CostEstimate(
        flops=b * (2 * n * nfeat * out_dim + 2 * n * n * out_dim),
        transcendentals=b * out_dim,
        bytes_accessed=(
            b * n * n * itemsize_bf16            # A_norm
            + b * n * nfeat * itemsize_bf16      # feature
            + nfeat * out_dim * itemsize_bf16    # W
            + out_dim * itemsize_f32             # b
            + b * n * out_dim * itemsize_f32     # x out
            + b * out_dim * itemsize_f32         # h out
        ),
    )

    x_out, h_out = pl.pallas_call(
        kernel,
        out_shape=(
            jax.ShapeDtypeStruct((b, n, out_dim), jnp.float32),
            jax.ShapeDtypeStruct((b, 1, out_dim), jnp.float32),
        ),
        grid=(b,),
        in_specs=[
            pl.BlockSpec((None, n, n), lambda i: (i, 0, 0)),        # A_norm[i]
            pl.BlockSpec((None, n, nfeat), lambda i: (i, 0, 0)),    # feature[i]
            pl.BlockSpec((nfeat, out_dim), lambda i: (0, 0)),       # W (resident)
            pl.BlockSpec((1, out_dim), lambda i: (0, 0)),           # b (resident)
        ],
        out_specs=(
            pl.BlockSpec((None, n, out_dim), lambda i: (i, 0, 0)),  # x
            pl.BlockSpec((None, 1, out_dim), lambda i: (i, 0, 0)),  # h
        ),
        compiler_params=pltpu.CompilerParams(
            dimension_semantics=("parallel",),
        ),
        cost_estimate=cost,
    )(
        a_norm.astype(jnp.bfloat16),
        feature.astype(jnp.bfloat16),
        weight.astype(jnp.bfloat16),
        bias.reshape(1, out_dim).astype(jnp.float32),
    )
    return x_out, h_out.reshape(b, out_dim)


def build_normalized_adjacency(edge_index, num_nodes):
    """Dense D^-1/2 (A + I) D^-1/2 matching torch_geometric gcn_norm defaults.

    Matches add_remaining_self_loops: explicit self-loops in edge_index are
    dropped and exactly one weight-1 self-loop is added for every node.
    """
    src = edge_index[0]
    dst = edge_index[1]
    w = jnp.where(src != dst, 1.0, 0.0).astype(jnp.float32)
    a = jnp.zeros((num_nodes, num_nodes), jnp.float32).at[dst, src].add(w)
    a = a + jnp.eye(num_nodes, dtype=jnp.float32)
    deg = a.sum(axis=1)
    dinv = jnp.where(deg > 0, 1.0 / jnp.sqrt(deg), 0.0)
    return dinv[:, None] * a * dinv[None, :]


def net2_forward(feature, edge_index, weight, bias):
    """Single-graph Net2.forward — the B=1 case of the batched kernel."""
    a_norm = build_normalized_adjacency(edge_index, feature.shape[0])
    x_out, h_out = net2_pallas_batched(a_norm[None], feature[None], weight, bias)
    return x_out[0], h_out[0]


def _reference(a_norm, feature, weight, bias):
    x = jnp.maximum(a_norm @ (feature @ weight) + bias[None, :], 0.0)
    h = jax.nn.sigmoid(x.mean(axis=0))
    return x, h


if __name__ == "__main__":
    # Small shapes consistent with the module: nfeat=32, out=16, N=16 nodes,
    # plus a batched demo with B=4 graphs to exercise the grid axis.
    N, NFEAT, OUT, B, E = 16, 32, 16, 4, 48

    key = jax.random.PRNGKey(0)
    k_feat, k_w, k_b, k_edges = jax.random.split(key, 4)

    feature_b = jax.random.normal(k_feat, (B, N, NFEAT), dtype=jnp.float32)
    weight = jax.random.normal(k_w, (NFEAT, OUT), dtype=jnp.float32) * (
        1.0 / jnp.sqrt(jnp.float32(NFEAT))
    )
    bias = jax.random.normal(k_b, (OUT,), dtype=jnp.float32) * 0.01
    edge_index_b = jax.random.randint(k_edges, (B, 2, E), 0, N, dtype=jnp.int32)

    # --- Single-graph Net2 forward (module semantics) ---
    feature = feature_b[0]
    edge_index = edge_index_b[0]
    x_out, h_out = jax.jit(net2_forward)(feature, edge_index, weight, bias)
    jax.block_until_ready((x_out, h_out))
    assert x_out.shape == (N, OUT) and h_out.shape == (OUT,)

    a0 = build_normalized_adjacency(edge_index, N)
    x_ref, h_ref = _reference(a0, feature, weight, bias)
    assert np.allclose(np.asarray(x_out), np.asarray(x_ref), atol=5e-2, rtol=5e-2)
    assert np.allclose(np.asarray(h_out), np.asarray(h_ref), atol=5e-2, rtol=5e-2)

    # --- Batched forward: B graphs in one pallas_call (one grid step each) ---
    a_batch = jnp.stack(
        [build_normalized_adjacency(edge_index_b[i], N) for i in range(B)]
    )
    xb, hb = jax.jit(net2_pallas_batched)(a_batch, feature_b, weight, bias)
    jax.block_until_ready((xb, hb))
    assert xb.shape == (B, N, OUT) and hb.shape == (B, OUT)
    for i in range(B):
        xr, hr = _reference(a_batch[i], feature_b[i], weight, bias)
        assert np.allclose(np.asarray(xb[i]), np.asarray(xr), atol=5e-2, rtol=5e-2)
        assert np.allclose(np.asarray(hb[i]), np.asarray(hr), atol=5e-2, rtol=5e-2)

    print("KERNEL_OK")
</pallas_src>

<mosaic_0001>
module attributes {stable_mosaic.version = 11 : i64} {
  func.func private @main(%arg0: i32) attributes {dimension_semantics = [#tpu.dimension_semantics<core_parallel>], iteration_bounds = array<i64: 2>, tpu.core_type = #tpu.core_type<sc_scalar_subcore>, window_params = []} {
    return
  }
}

module attributes {stable_mosaic.version = 11 : i64} {
  func.func private @main(%arg0: i32) attributes {dimension_semantics = [#tpu.dimension_semantics<core_parallel>], iteration_bounds = array<i64: 2>, tpu.core_type = #tpu.core_type<sc_scalar_subcore>, window_params = []} {
    return
  }
}

module attributes {stable_mosaic.version = 11 : i64} {
  func.func @_net2_kernel(%arg0: i32, %arg1: memref<1x16x16xbf16, #tpu.memory_space<vmem>>, %arg2: memref<1x16x32xbf16, #tpu.memory_space<vmem>>, %arg3: memref<32x16xbf16, #tpu.memory_space<vmem>>, %arg4: memref<1x16xf32, #tpu.memory_space<vmem>>, %arg5: memref<1x16x16xf32, #tpu.memory_space<vmem>>, %arg6: memref<1x1x16xf32, #tpu.memory_space<vmem>>) attributes {dimension_semantics = [#tpu.dimension_semantics<parallel>], iteration_bounds = array<i64: 1>, scalar_prefetch = 0 : i64, scratch_operands = 0 : i64, tpu.core_type = #tpu.core_type<tc>, window_params = [{transform_indices = @transform_0, window_bounds = array<i64: 1, 16, 16>}, {transform_indices = @transform_1, window_bounds = array<i64: 1, 16, 32>}, {pipeline_mode = #tpu.pipeline_mode<synchronous>, transform_indices = @transform_2, window_bounds = array<i64: 32, 16>}, {pipeline_mode = #tpu.pipeline_mode<synchronous>, transform_indices = @transform_3, window_bounds = array<i64: 1, 16>}, {transform_indices = @transform_4, window_bounds = array<i64: 1, 16, 16>}, {transform_indices = @transform_5, window_bounds = array<i64: 1, 1, 16>}]} {
    %c0 = arith.constant 0 : index
    %c0_0 = arith.constant 0 : index
    %c0_1 = arith.constant 0 : index
    %0 = vector.load %arg2[%c0, %c0_0, %c0_1] : memref<1x16x32xbf16, #tpu.memory_space<vmem>>, vector<1x16x32xbf16>
    %1 = vector.shape_cast %0 : vector<1x16x32xbf16> to vector<16x32xbf16>
    %c0_2 = arith.constant 0 : index
    %c0_3 = arith.constant 0 : index
    %2 = vector.load %arg3[%c0_2, %c0_3] : memref<32x16xbf16, #tpu.memory_space<vmem>>, vector<32x16xbf16>
    %cst = arith.constant dense<0.000000e+00> : vector<16x16xf32>
    %3 = tpu.matmul %1, %2, %cst {dimension_numbers = #tpu.dot_dimension_numbers<[1], [0], [0], [1], [0, 0, 1, 1], [], []>} : vector<16x32xbf16>, vector<32x16xbf16>, vector<16x16xf32> -> vector<16x16xf32>
    %c0_4 = arith.constant 0 : index
    %c0_5 = arith.constant 0 : index
    %c0_6 = arith.constant 0 : index
    %4 = vector.load %arg1[%c0_4, %c0_5, %c0_6] : memref<1x16x16xbf16, #tpu.memory_space<vmem>>, vector<1x16x16xbf16>
    %5 = vector.shape_cast %4 : vector<1x16x16xbf16> to vector<16x16xbf16>
    %6 = arith.truncf %3 : vector<16x16xf32> to vector<16x16xbf16>
    %cst_7 = arith.constant dense<0.000000e+00> : vector<16x16xf32>
    %7 = tpu.matmul %5, %6, %cst_7 {dimension_numbers = #tpu.dot_dimension_numbers<[1], [0], [0], [1], [0, 0, 1, 1], [], []>} : vector<16x16xbf16>, vector<16x16xbf16>, vector<16x16xf32> -> vector<16x16xf32>
    %c0_8 = arith.constant 0 : index
    %c0_9 = arith.constant 0 : index
    %8 = vector.load %arg4[%c0_8, %c0_9] : memref<1x16xf32, #tpu.memory_space<vmem>>, vector<1x16xf32>
    %9 = vector.broadcast %8 : vector<1x16xf32> to vector<16x16xf32>
    %10 = arith.addf %7, %9 : vector<16x16xf32>
    %cst_10 = arith.constant 0.000000e+00 : f32
    %11 = vector.broadcast %cst_10 : f32 to vector<16x16xf32>
    %12 = arith.maximumf %10, %11 : vector<16x16xf32>
    %c0_11 = arith.constant 0 : index
    %c0_12 = arith.constant 0 : index
    %c0_13 = arith.constant 0 : index
    %13 = vector.load %arg5[%c0_11, %c0_12, %c0_13] : memref<1x16x16xf32, #tpu.memory_space<vmem>>, vector<1x16x16xf32>
    %14 = vector.shape_cast %13 : vector<1x16x16xf32> to vector<16x16xf32>
    %15 = vector.shape_cast %12 : vector<16x16xf32> to vector<1x16x16xf32>
    tpu.vector_store %arg5[%c0_11, %c0_12, %c0_13], %15 {strides = array<i32>} : memref<1x16x16xf32, #tpu.memory_space<vmem>>, vector<1x16x16xf32>,
    %cst_14 = arith.constant dense<0.000000e+00> : vector<16xf32>
    %16 = vector.multi_reduction <add>, %12, %cst_14 [0] : vector<16x16xf32> to vector<16xf32>
    %17 = vector.shape_cast %16 : vector<16xf32> to vector<1x16xf32>
    %cst_15 = arith.constant 6.250000e-02 : f32
    %18 = vector.broadcast %cst_15 : f32 to vector<1x16xf32>
    %19 = arith.mulf %17, %18 : vector<1x16xf32>
    %cst_16 = arith.constant 0.000000e+00 : f32
    %20 = vector.broadcast %cst_16 : f32 to vector<1x16xf32>
    %21 = arith.subf %20, %19 : vector<1x16xf32>
    %22 = math.exp %21 : vector<1x16xf32>
    %cst_17 = arith.constant 1.000000e+00 : f32
    %23 = vector.broadcast %cst_17 : f32 to vector<1x16xf32>
    %24 = arith.addf %23, %22 : vector<1x16xf32>
    %25 = tpu.reciprocal %24 {approx = true} : vector<1x16xf32> -> vector<1x16xf32>
    %c0_18 = arith.constant 0 : index
    %c0_19 = arith.constant 0 : index
    %c0_20 = arith.constant 0 : index
    %26 = vector.load %arg6[%c0_18, %c0_19, %c0_20] : memref<1x1x16xf32, #tpu.memory_space<vmem>>, vector<1x1x16xf32>
    %27 = vector.shape_cast %26 : vector<1x1x16xf32> to vector<1x16xf32>
    %28 = vector.shape_cast %25 : vector<1x16xf32> to vector<1x1x16xf32>
    tpu.vector_store %arg6[%c0_18, %c0_19, %c0_20], %28 {strides = array<i32>} : memref<1x1x16xf32, #tpu.memory_space<vmem>>, vector<1x1x16xf32>,
    return
  }
  func.func @transform_0(%arg0: i32) -> (i32, i32, i32) {
    %c0_i32 = arith.constant 0 : i32
    %c0_i32_0 = arith.constant 0 : i32
    %c0_i32_1 = arith.constant 0 : i32
    return %arg0, %c0_i32, %c0_i32_0 : i32, i32, i32
  }
  func.func @transform_1(%arg0: i32) -> (i32, i32, i32) {
    %c0_i32 = arith.constant 0 : i32
    %c0_i32_0 = arith.constant 0 : i32
    %c0_i32_1 = arith.constant 0 : i32
    return %arg0, %c0_i32, %c0_i32_0 : i32, i32, i32
  }
  func.func @transform_2(%arg0: i32) -> (i32, i32) {
    %c0_i32 = arith.constant 0 : i32
    %c0_i32_0 = arith.constant 0 : i32
    %c0_i32_1 = arith.constant 0 : i32
    return %c0_i32, %c0_i32_0 : i32, i32
  }
  func.func @transform_3(%arg0: i32) -> (i32, i32) {
    %c0_i32 = arith.constant 0 : i32
    %c0_i32_0 = arith.constant 0 : i32
    %c0_i32_1 = arith.constant 0 : i32
    return %c0_i32, %c0_i32_0 : i32, i32
  }
  func.func @transform_4(%arg0: i32) -> (i32, i32, i32) {
    %c0_i32 = arith.constant 0 : i32
    %c0_i32_0 = arith.constant 0 : i32
    %c0_i32_1 = arith.constant 0 : i32
    return %arg0, %c0_i32, %c0_i32_0 : i32, i32, i32
  }
  func.func @transform_5(%arg0: i32) -> (i32, i32, i32) {
    %c0_i32 = arith.constant 0 : i32
    %c0_i32_0 = arith.constant 0 : i32
    %c0_i32_1 = arith.constant 0 : i32
    return %arg0, %c0_i32, %c0_i32_0 : i32, i32, i32
  }
}

</mosaic_0001>

<bundles_post_ra>
// kernel: net2_forward.1
= control target key start
LH: loop header
LB: loop body
LE: loop exit
PB: predicated region body
PF: predicated region fallthrough
CT: control target
= control target key end

     0   :  { %11 = vsyncpa [#allocation3], 0  ;;  %v289_v1 = vmov 0.0   ;;  %vm290_vm0 = vmmov 0   ;;  %s369_s0 = inlined_call_operand.vmem [shape: bf16[1,16,16], index: 0, kind: input, shape index: {}]   ;;  %s370_s1 = inlined_call_operand.vmem [shape: bf16[1,16,32], index: 1, kind: input, shape index: {}]   ;;  %s371_s2 = inlined_call_operand.vmem [shape: bf16[32,16], index: 2, kind: input, shape index: {}]   ;;  %s372_s3 = inlined_call_operand.vmem [shape: f32[1,16], index: 3, kind: input, shape index: {}]   ;;  %s373_s4 = inlined_call_operand.hbm [shape: f32[1,16,16], index: 4, kind: output, shape index: {0}]   ;;  %s374_s5 = inlined_call_operand.hbm [shape: f32[1,1,16], index: 5, kind: output, shape index: {1}]  }
   0x1   :  { %v233_v0 = vld [vmem:[%s371_s2] sm:$0xff]   ;;  %213 = vmatprep.subr.bf16.mxu0 %v289_v1  ;;  %221 = vmatprep.subr.bf16.mxu1 %v289_v1  ;;  %v234_v2 = vld [vmem:[%s371_s2 + $0x8] sm:$0xff]  }
   0x2   :  { %214 = vmatpush3.bf16.msra.mxu0 %v233_v0  ;;  %217 = vmatprep.mubr.msk.bf16.mxu0 %vm290_vm0, %v289_v1 }
   0x3   :  { %215 = vmatprep.subr.bf16.mxu0 %v289_v1  ;;  %223 = vmatprep.mubr.msk.bf16.mxu1 %vm290_vm0, %v289_v1 }
   0x4   :  { %12 = vsyncpa [#allocation5], 0  ;;  %v235_v3 = vld [vmem:[%s370_s1] sm:$0xff]   ;;  %vm45_vm1 = vcmask 261120   ;;  %vm105_vm2 = vcmask 130048   ;;  %s291_s1 = smov [#allocation2]  }
   0x5   :  { %v236_v9 = vld [vmem:[%s369_s0] sm:$0xff]   ;;  %s176_s27 = sshll.u32 %s291_s1, 4  ;;  %s177_s27 = int_to_ptr.vmem [resolvable:$true] %s176_s27 }
   0x6   :  { %216 = vmatpush3.bf16.msra.mxu0 %v234_v2  ;;  %v205_v10 = vld [vmem:[%s372_s3] ss:$0 sm:$0xff]  ;;  %s241_s0 = scalar_lea.vmem %s177_s27, 256  ;;  %p246_p1 = scmp.lt.s32.totalorder %s177_s27, %s177_s27 }
   0x7   :  { %p242_p0 = scmp.ne.s32.totalorder %s177_s27, %s241_s0  ;;  %p247_p2 = scmp.lt.s32.totalorder %s241_s0, %s241_s0 }
   0x9   :  { %218 = vmatmul.mubr.msk.bf16.vlgmr.msra.gmra.mrb[0].mxu0 %vm45_vm1, %v235_v3  ;;  %p248_p3 = por %p247_p2, %p246_p1 }
   0xb   :  { %p249_p4 = pnand %p248_p3, %p242_p0 }
  0xdc   :  { %v83_v4 = vpop.f32.mrb[0].mxu0 }
  0xdd   :  { %v219_v5 = vpop.f32.mrb[1].mxu0 }
  0xde   :  { %v86_v6 = vpop.f32.mrb[2].mxu0 }
  0xdf   :  { %v92_v7 = vpack.c.bf16 %v86_v6, %v83_v4  ;;  %v220_v8 = vpop.f32.mrb[3].mxu0 }
  0xe1   :  { %222 = vmatpush3.bf16.msra.mxu1 %v92_v7 }
  0xe4   :  { %224 = vmatmul.mubr.msk.bf16.vlgmr.msra.gmra.mrb[0].mxu1 %vm105_vm2, %v236_v9 }
 0x1b7   :  { %v143_v11 = vpop.f32.mrb[0].mxu1 }
 0x1b8   :  { %v144_v12 = vadd.f32 %v205_v10, %v143_v11  ;;  %v225_v13 = vpop.f32.mrb[1].mxu1 }
 0x1b9   :  { %v146_v14 = vpop.f32.mrb[2].mxu1 }
 0x1ba   :  { %v150_v15 = vmax.f32 %v144_v12, 0.0  ;;  %v147_v16 = vadd.f32 %v205_v10, %v146_v14  ;;  %v226_v17 = vpop.f32.mrb[3].mxu1 }
 0x1bc   :  { %152 = vst.msk [vmem:[#allocation2] sm:$0xff] %vm105_vm2, %v150_v15  ;;  %v151_v18 = vmax.f32 %v147_v16, 0.0  ;;  %v154_v19 = vsel %vm105_vm2, %v150_v15, 0.0 }
 0x1be   :  { %153 = vst.msk [vmem:[#allocation2 + $0x8] sm:$0xff] %vm105_vm2, %v151_v18  ;;  %v155_v20 = vsel %vm105_vm2, %v151_v18, 0.0 }
 0x1bf   :  { %v156_v21 = vadd.f32 %v155_v20, %v154_v19 }
 0x1c0   :  { %252 = shalt.err (!%p249_p4)
}
 0x1c1   :  { %s253_s29 = scalar_lea.hbm %s373_s4, 256 }
 0x1c2   :  { %p254_p5 = scmp.ne.s32.totalorder %s373_s4, %s253_s29  ;;  %p257_p6 = scmp.lt.u32.totalorder %s253_s29, %s373_s4 }
 0x1c4   :  { %p259_p7 = pnand %p257_p6, %p254_p5 }
 0x1c6   :  { %262 = shalt.err (!%p259_p7)
}
 0x1c7   :  { %s292_s9 = smov 128   ;;  %s293_s10 = smov 8   ;;  %v157_v22 = vrot.slane %v156_v21, 4  ;;  %vm169_vm3 = vcmask 122880  }
 0x1c8   :  { %182 = dma.vmem_to_hbm [thread:$0]  %s177_s27, 256, %s373_s4, [#allocation3], %s292_s9, %s292_s9, %s293_s10  }
 0x1c9   :  { %v158_v23 = vadd.f32 %v157_v22, %v156_v21  ;;  %s294_s13 = smov [#allocation4]  }
 0x1ca   :  { %s189_s14 = sshll.u32 %s294_s13, 4  ;;  %s190_s14 = int_to_ptr.vmem [resolvable:$true] %s189_s14 }
 0x1cb   :  { %v159_v24 = vrot.slane %v158_v23, 2  ;;  %s263_s4 = scalar_lea.vmem %s190_s14, 16  ;;  %s267_s15 = scalar_lea.vmem %s190_s14, 32 }
 0x1cc   :  { %p264_p8 = scmp.ne.s32.totalorder %s190_s14, %s263_s4  ;;  %p268_p9 = scmp.lt.s32.totalorder %s190_s14, %s190_s14 }
 0x1cd   :  { %v160_v25 = vadd.f32 %v159_v24, %v158_v23  ;;  %p269_p10 = scmp.lt.s32.totalorder %s267_s15, %s263_s4 }
 0x1cf   :  { %v161_v26 = vrot.slane %v160_v25, 1  ;;  %p270_p11 = por %p269_p10, %p268_p9 }
 0x1d1   :  { %v162_v27 = vadd.f32 %v161_v26, %v160_v25  ;;  %p271_p12 = pnand %p270_p11, %p264_p8 }
 0x1d3   :  { %v163_v28 = vmul.f32 0.0625, %v162_v27 }
 0x1d5   :  { %v164_v29 = vsub.f32 0.0, %v163_v28 }
 0x1d7   :  { %v165_v30 = vmul.f32 1.442695, %v164_v29 }
 0x1d9   :  { %237 = vpow2.f32 %v165_v30 }
 0x1e3   :  { %v238_v31 = vpop.eup %237 }
 0x1e4   :  { %v167_v32 = vadd.f32 1.0, %v238_v31 }
 0x1e6   :  { %239 = vrcp.f32 %v167_v32 }
 0x1f0   :  { %v240_v33 = vpop.eup %239 }
 0x1f1   :  { %170 = vst.msk [vmem:[#allocation4] sm:$0x1] %vm169_vm3, %v240_v33 }
 0x1f2   :  { %274 = shalt.err (!%p271_p12)
}
 0x1f3   :  { %s275_s18 = scalar_lea.hbm %s374_s5, 16 }
 0x1f4   :  { %p276_p13 = scmp.ne.s32.totalorder %s374_s5, %s275_s18  ;;  %p279_p0 = scmp.lt.u32.totalorder %s275_s18, %s374_s5 }
 0x1f6   :  { %p281_p1 = pnand %p279_p0, %p276_p13 }
 0x1f8   :  { %284 = shalt.err (!%p281_p1)
}
 0x1f9   :  { %192 = dma.vmem_to_hbm [thread:$0]  %s190_s14, 16, %s374_s5, [#allocation5]  }
 0x1fa   :  { %285 = dma.done.wait [#allocation3], 256  }
 0x1fb   :  { %286 = vsyncadd [#allocation3], 4294967040 }
 0x1fc   :  { %287 = dma.done.wait [#allocation5], 16  }
 0x1fd   :  { %288 = vsyncadd [#allocation5], 4294967280 }
 0x1fe   :  { %199 = vsyncpa [#allocation3], 1 }
 0x1ff   :  { %200 = vsyncpa [#allocation5], 1 }

</bundles_post_ra>
